<compile_context>
chip_gen: v7x
topology: tpu7x:2x2x1
jax: 0.10.0
libtpu: 0.0.40
codegen_flags: <defaults>
</compile_context>

<pallas_src>
import jax
import jax.numpy as jnp
from jax.experimental import pallas as pl
from jax.experimental.pallas import tpu as pltpu

NEG_BIG = -1e30  # finite "masked" bias; exp(masked - max) underflows to exactly 0.
                 # A fully-masked row gives a uniform 1/S row (not PyTorch's NaNs).


def _make_kernel(apply_softmax: bool):
    def kernel(h_ref, w_ref, b_ref, uw_ref, maskb_ref, out_ref):
        # h_ref:     (TB, S, Fin)  activations (original dtype, no padding)
        # w_ref:     (Fin, Fout)   W^T (PyTorch (out,in) transposed), resident
        # b_ref:     (1, Fout)     bias row (f32), resident
        # uw_ref:    (1, Fout)     uw row (f32), resident
        # maskb_ref: (TB, S, 1)    additive bias column: 0 valid / -1e30 masked
        # out_ref:   (TB, S, 1)    per-row result written as a column
        TB = h_ref.shape[0]
        w = w_ref[...]
        b = b_ref[...]
        uw = uw_ref[...]

        def compute_row(t):
            # (S, Fin) @ (Fin, Fout) on the MXU, f32 accumulate.
            u = jnp.dot(h_ref[t], w, preferred_element_type=jnp.float32)
            u = jnp.tanh(u + b)                              # (S, Fout) f32
            s = jnp.sum(u * uw, axis=-1, keepdims=True)      # (S, 1)  lane reduce
            s = s + maskb_ref[t]                             # additive mask bias
            if apply_softmax:
                m = jnp.max(s, axis=0, keepdims=True)        # (1, 1) sublane reduce
                e = jnp.exp(s - m)
                denom = jnp.sum(e, axis=0, keepdims=True)    # (1, 1)
                out_ref[t] = e / denom                       # exact normalization
            else:
                out_ref[t] = jnp.where(maskb_ref[t] < -1.0, -jnp.inf, s)

        if TB <= 8:
            # Short fixed trip count: fully unroll at trace time.
            for t in range(TB):
                compute_row(t)
        else:
            def body(t, carry):
                compute_row(t)
                return carry
            jax.lax.fori_loop(0, TB, body, 0)

    return kernel


def _pick_batch_tile(B, S, Fin, itemsize):
    """Largest divisor of B that (a) keeps <= ~1 MiB of h per grid step and
    (b) leaves >= 2 grid steps when B >= 2 (both v7x TensorCores get work)."""
    bytes_per_row = max(1, S * Fin * itemsize)
    cap = max(1, (1 << 20) // bytes_per_row)   # ~1 MiB of h per step
    cap = min(cap, 512)
    if B >= 2:
        cap = min(cap, B // 2)
    cap = max(1, min(cap, B))
    tb = 1
    for d in range(1, cap + 1):
        if B % d == 0:
            tb = d
    return tb


def hierachy_attention(h, weight, bias, uw_weight, mask, *, apply_softmax=True):
    """Pallas TPU forward of HierachyAttention.

    h:         (B, S, Fin) float array
    weight:    (Fout, Fin) -- nn.Linear(in_features, out_features).weight
    bias:      (Fout,)     -- its bias
    uw_weight: (Fout,)     -- nn.Linear(out_features, 1, bias=False).weight[0]
    mask:      (B, S) {0,1}/bool
    returns:   (B, S) f32 softmax over the sequence axis (or masked scores if
               apply_softmax=False).

    Fully-masked rows yield a uniform 1/S distribution (finite -1e30 bias) instead of
    PyTorch's NaNs; rows with >= 1 valid position match PyTorch exactly (all-f32 math).
    """
    B, S, Fin = h.shape
    Fout = weight.shape[0]

    w_t = weight.astype(h.dtype).T.reshape(Fin, Fout)          # (Fin, Fout)
    b_row = bias.astype(jnp.float32).reshape(1, Fout)
    uw_row = uw_weight.astype(jnp.float32).reshape(1, Fout)
    maskb = jnp.where(mask != 0, 0.0, NEG_BIG).astype(jnp.float32).reshape(B, S, 1)

    TB = _pick_batch_tile(B, S, Fin, jnp.dtype(h.dtype).itemsize)
    grid = (B // TB,)

    out = pl.pallas_call(
        _make_kernel(apply_softmax),
        out_shape=jax.ShapeDtypeStruct((B, S, 1), jnp.float32),
        grid=grid,
        in_specs=[
            pl.BlockSpec((TB, S, Fin), lambda i: (i, 0, 0)),   # h batch tile
            pl.BlockSpec((Fin, Fout), lambda i: (0, 0)),       # W^T (resident)
            pl.BlockSpec((1, Fout), lambda i: (0, 0)),         # bias (resident)
            pl.BlockSpec((1, Fout), lambda i: (0, 0)),         # uw (resident)
            pl.BlockSpec((TB, S, 1), lambda i: (i, 0, 0)),     # mask bias tile
        ],
        out_specs=pl.BlockSpec((TB, S, 1), lambda i: (i, 0, 0)),
        compiler_params=pltpu.CompilerParams(
            dimension_semantics=("parallel",),     # shard batch tiles across TCs
            vmem_limit_bytes=32 * 1024 * 1024,     # plenty for ~1 MiB tiles, v7x-safe
        ),
    )(h, w_t, b_row, uw_row, maskb)

    return out[:, :, 0]


def reference(h, weight, bias, uw_weight, mask):
    u = jnp.tanh(jnp.einsum("bsf,of->bso", h, weight) + bias[None, None, :])
    s = jnp.einsum("bso,o->bs", u, uw_weight)
    s = jnp.where(mask != 0, s, -jnp.inf)
    return jax.nn.softmax(s, axis=-1)


if __name__ == "__main__":
    B, S = 2, 8
    in_features, out_features = 32, 32

    key = jax.random.PRNGKey(0)
    k_h, k_w, k_b, k_uw = jax.random.split(key, 4)

    h = jax.random.normal(k_h, (B, S, in_features), dtype=jnp.float32)
    # PyTorch Linear(in_features, out_features): weight is (out, in).
    weight = jax.random.normal(k_w, (out_features, in_features), dtype=jnp.float32) * 0.1
    bias = jax.random.normal(k_b, (out_features,), dtype=jnp.float32) * 0.1
    # uw = Linear(out_features, 1, bias=False): weight (1, out_features) -> vector.
    uw_weight = jax.random.normal(k_uw, (out_features,), dtype=jnp.float32) * 0.1

    # Valid-length style mask (lengths 8 and 5), int32 {0,1}.
    lengths = jnp.array([[8], [5]], dtype=jnp.int32)
    mask = (jnp.arange(S, dtype=jnp.int32)[None, :] < lengths).astype(jnp.int32)

    alpha = hierachy_attention(h, weight, bias, uw_weight, mask)
    alpha = jax.block_until_ready(alpha)

    ref = reference(h, weight, bias, uw_weight, mask)
    assert alpha.shape == (B, S)
    assert jnp.allclose(alpha, ref, atol=1e-4, rtol=1e-3), (alpha, ref)
    # rows sum to 1 over the sequence axis (exact division in-kernel)
    assert jnp.allclose(jnp.sum(alpha, axis=-1), jnp.ones((B,)), atol=1e-5)

    print("KERNEL_OK")
</pallas_src>

<mosaic_0001>
module attributes {stable_mosaic.version = 11 : i64} {
  func.func @kernel(%arg0: i32, %arg1: memref<1x8x32xf32, #tpu.memory_space<vmem>>, %arg2: memref<32x32xf32, #tpu.memory_space<vmem>>, %arg3: memref<1x32xf32, #tpu.memory_space<vmem>>, %arg4: memref<1x32xf32, #tpu.memory_space<vmem>>, %arg5: memref<1x8x1xf32, #tpu.memory_space<vmem>>, %arg6: memref<1x8x1xf32, #tpu.memory_space<vmem>>) attributes {dimension_semantics = [#tpu.dimension_semantics<parallel>], iteration_bounds = array<i64: 2>, scalar_prefetch = 0 : i64, scratch_operands = 0 : i64, tpu.core_type = #tpu.core_type<tc>, window_params = [{transform_indices = @transform_0, window_bounds = array<i64: 1, 8, 32>}, {pipeline_mode = #tpu.pipeline_mode<synchronous>, transform_indices = @transform_1, window_bounds = array<i64: 32, 32>}, {pipeline_mode = #tpu.pipeline_mode<synchronous>, transform_indices = @transform_2, window_bounds = array<i64: 1, 32>}, {pipeline_mode = #tpu.pipeline_mode<synchronous>, transform_indices = @transform_3, window_bounds = array<i64: 1, 32>}, {transform_indices = @transform_4, window_bounds = array<i64: 1, 8, 1>}, {transform_indices = @transform_5, window_bounds = array<i64: 1, 8, 1>}]} {
    %c0 = arith.constant 0 : index
    %c0_0 = arith.constant 0 : index
    %0 = vector.load %arg2[%c0, %c0_0] : memref<32x32xf32, #tpu.memory_space<vmem>>, vector<32x32xf32>
    %c0_1 = arith.constant 0 : index
    %c0_2 = arith.constant 0 : index
    %1 = vector.load %arg3[%c0_1, %c0_2] : memref<1x32xf32, #tpu.memory_space<vmem>>, vector<1x32xf32>
    %c0_3 = arith.constant 0 : index
    %c0_4 = arith.constant 0 : index
    %2 = vector.load %arg4[%c0_3, %c0_4] : memref<1x32xf32, #tpu.memory_space<vmem>>, vector<1x32xf32>
    %c0_5 = arith.constant 0 : index
    %c0_6 = arith.constant 0 : index
    %c0_7 = arith.constant 0 : index
    %3 = vector.load %arg1[%c0_5, %c0_6, %c0_7] : memref<1x8x32xf32, #tpu.memory_space<vmem>>, vector<1x8x32xf32>
    %4 = vector.shape_cast %3 : vector<1x8x32xf32> to vector<8x32xf32>
    %cst = arith.constant dense<0.000000e+00> : vector<8x32xf32>
    %5 = tpu.matmul %4, %0, %cst {dimension_numbers = #tpu.dot_dimension_numbers<[1], [0], [0], [1], [0, 0, 1, 1], [], []>} : vector<8x32xf32>, vector<32x32xf32>, vector<8x32xf32> -> vector<8x32xf32>
    %6 = vector.broadcast %1 : vector<1x32xf32> to vector<8x32xf32>
    %7 = arith.addf %5, %6 : vector<8x32xf32>
    %8 = math.tanh %7 : vector<8x32xf32>
    %9 = vector.broadcast %2 : vector<1x32xf32> to vector<8x32xf32>
    %10 = arith.mulf %8, %9 : vector<8x32xf32>
    %cst_8 = arith.constant dense<0.000000e+00> : vector<8xf32>
    %11 = vector.multi_reduction <add>, %10, %cst_8 [1] : vector<8x32xf32> to vector<8xf32>
    %12 = vector.shape_cast %11 : vector<8xf32> to vector<8x1xf32>
    %c0_9 = arith.constant 0 : index
    %c0_10 = arith.constant 0 : index
    %c0_11 = arith.constant 0 : index
    %13 = vector.load %arg5[%c0_9, %c0_10, %c0_11] : memref<1x8x1xf32, #tpu.memory_space<vmem>>, vector<1x8x1xf32>
    %14 = vector.shape_cast %13 : vector<1x8x1xf32> to vector<8x1xf32>
    %15 = arith.addf %12, %14 : vector<8x1xf32>
    %cst_12 = arith.constant dense<0xFF800000> : vector<1xf32>
    %16 = vector.multi_reduction <maximumf>, %15, %cst_12 [0] : vector<8x1xf32> to vector<1xf32>
    %17 = vector.shape_cast %16 : vector<1xf32> to vector<1x1xf32>
    %18 = vector.broadcast %17 : vector<1x1xf32> to vector<8x1xf32>
    %19 = arith.subf %15, %18 : vector<8x1xf32>
    %20 = math.exp %19 : vector<8x1xf32>
    %cst_13 = arith.constant dense<0.000000e+00> : vector<1xf32>
    %21 = vector.multi_reduction <add>, %20, %cst_13 [0] : vector<8x1xf32> to vector<1xf32>
    %22 = vector.shape_cast %21 : vector<1xf32> to vector<1x1xf32>
    %23 = vector.broadcast %22 : vector<1x1xf32> to vector<8x1xf32>
    %24 = arith.divf %20, %23 : vector<8x1xf32>
    %c0_14 = arith.constant 0 : index
    %c0_15 = arith.constant 0 : index
    %c0_16 = arith.constant 0 : index
    %25 = vector.load %arg6[%c0_14, %c0_15, %c0_16] : memref<1x8x1xf32, #tpu.memory_space<vmem>>, vector<1x8x1xf32>
    %26 = vector.shape_cast %25 : vector<1x8x1xf32> to vector<8x1xf32>
    %27 = vector.shape_cast %24 : vector<8x1xf32> to vector<1x8x1xf32>
    tpu.vector_store %arg6[%c0_14, %c0_15, %c0_16], %27 {strides = array<i32>} : memref<1x8x1xf32, #tpu.memory_space<vmem>>, vector<1x8x1xf32>,
    return
  }
  func.func @transform_0(%arg0: i32) -> (i32, i32, i32) {
    %c0_i32 = arith.constant 0 : i32
    %c0_i32_0 = arith.constant 0 : i32
    %c0_i32_1 = arith.constant 0 : i32
    return %arg0, %c0_i32, %c0_i32_0 : i32, i32, i32
  }
  func.func @transform_1(%arg0: i32) -> (i32, i32) {
    %c0_i32 = arith.constant 0 : i32
    %c0_i32_0 = arith.constant 0 : i32
    %c0_i32_1 = arith.constant 0 : i32
    return %c0_i32, %c0_i32_0 : i32, i32
  }
  func.func @transform_2(%arg0: i32) -> (i32, i32) {
    %c0_i32 = arith.constant 0 : i32
    %c0_i32_0 = arith.constant 0 : i32
    %c0_i32_1 = arith.constant 0 : i32
    return %c0_i32, %c0_i32_0 : i32, i32
  }
  func.func @transform_3(%arg0: i32) -> (i32, i32) {
    %c0_i32 = arith.constant 0 : i32
    %c0_i32_0 = arith.constant 0 : i32
    %c0_i32_1 = arith.constant 0 : i32
    return %c0_i32, %c0_i32_0 : i32, i32
  }
  func.func @transform_4(%arg0: i32) -> (i32, i32, i32) {
    %c0_i32 = arith.constant 0 : i32
    %c0_i32_0 = arith.constant 0 : i32
    %c0_i32_1 = arith.constant 0 : i32
    return %arg0, %c0_i32, %c0_i32_0 : i32, i32, i32
  }
  func.func @transform_5(%arg0: i32) -> (i32, i32, i32) {
    %c0_i32 = arith.constant 0 : i32
    %c0_i32_0 = arith.constant 0 : i32
    %c0_i32_1 = arith.constant 0 : i32
    return %arg0, %c0_i32, %c0_i32_0 : i32, i32, i32
  }
}

</mosaic_0001>

<bundles_post_ra>
// kernel: tpu_custom_call.1
= control target key start
LH: loop header
LB: loop body
LE: loop exit
PB: predicated region body
PF: predicated region fallthrough
CT: control target
= control target key end

     0   :  { %10 = vsyncpa [#allocation3], 0  ;;  %s593_s18 = smov 0   ;;  %s666_s0 = inlined_call_operand.vmem [shape: f32[2,8,32], index: 0, kind: input, shape index: {}]   ;;  %s667_s1 = inlined_call_operand.hbm [shape: f32[32,32], index: 1, kind: input, shape index: {}]   ;;  %s668_s2 = inlined_call_operand.vmem [shape: f32[1,32], index: 2, kind: input, shape index: {}]   ;;  %s669_s3 = inlined_call_operand.vmem [shape: f32[1,32], index: 3, kind: input, shape index: {}]   ;;  %s670_s4 = inlined_call_operand.vmem [shape: f32[2,8,1], index: 4, kind: input, shape index: {}]   ;;  %s671_s5 = inlined_call_operand.vmem [shape: f32[2,8,1], index: 5, kind: output, shape index: {}]  }
   0x1 LB: > { %s599_s19 = sadd.s32 4294967295, %s555_s18   ;;  %p452_p0 = scmp.ge.s32.totalorder %s555_s18, 1  ;;  %s555_s18 = sphi %s593_s18, %s16_s18  }
   0x2   : > { %p162_p1 = scmp.lt.s32.totalorder %s555_s18, 3  ;;  %s557_s20 = smov [#allocation2]  }
   0x3   : > { %s174_s21 = sshll.u32 %s557_s20, 4  ;;  %p672_p3 = scmp.eq.s32.totalorder %s599_s19, 0  ;;  %s175_s21 = int_to_ptr.vmem [resolvable:$true] %s174_s21 }
   0x4   : > { %p603_p2 = pnand %p452_p0, %p162_p1  ;;  %s517_s26 = scalar_lea.hbm %s667_s1, 512 }
   0x5   : > { %p518_p6 = scmp.ne.s32.totalorder %s667_s1, %s517_s26  ;;  %p524_p10 = scmp.lt.u32.totalorder %s517_s26, %s667_s1 }
   0x6   : > { %s674_s22 = scalar_select %p603_p2, 1, 0 }
   0x7   : > { %p491_p4 = pneg %p603_p2 }
   0x9   : > { %p612_p5 = pnand %p672_p3, %p491_p4 }
   0xb   : > { %p519_p7 = pneg %p612_p5 }
   0xd   : > { %p520_p8 = pnand %p519_p7, %p518_p6 }
   0xf   : > { %p521_p9 = pneg %p520_p8 }
  0x11   : > { %p526_p11 = pnand %p524_p10, %p521_p9 }
  0x13   : > { %529 = shalt.err (!%p526_p11)
}
  0x14   : > { %s530_s6 = scalar_lea.vmem %s175_s21, 512  ;;  %p538_p1 = scmp.lt.s32.totalorder %s175_s21, %s175_s21 }
  0x15   : > { %p531_p12 = scmp.ne.s32.totalorder %s175_s21, %s530_s6  ;;  %p539_p4 = scmp.lt.s32.totalorder %s530_s6, %s530_s6 }
  0x17   : > { %p533_p13 = pnand %p531_p12, %p519_p7  ;;  %p540_p3 = por %p539_p4, %p538_p1 }
  0x19   : > { %p534_p0 = pneg %p533_p13 }
  0x1b   : > { %p541_p2 = pnand %p540_p3, %p534_p0 }
  0x1d   : > { %544 = shalt.err (!%p541_p2)
}
  0x1e   : > { %s558_s7 = smov 128   ;;  %s559_s8 = smov 8  }
  0x1f   : > { %494 = dma.hbm_to_vmem [thread:$0]  (!%p612_p5), %s667_s1, 512, %s175_s21, [#allocation3], %s558_s7, %s558_s7, %s559_s8  }
  0x20   : > { %p676_p6 = scmp.ne.s32.totalorder %s674_s22, 0 }
  0x21   : > { %p677_p8 = scmp.eq.s32.totalorder (!%p676_p6), %s599_s19, 0 }
  0x22   : > { %210 = sbr.rel (%p676_p6) target bundleno = 479 (0x1df), region = 40 }
  0x29   : > { %550 = dma.done.wait (%p677_p8), [#allocation3], 512   ;;  %p678_p7 = pmov %p677_p8 }
  0x2a   : > { %p240_p2 = scmp.lt.s32.totalorder %s599_s19, 1  ;;  %v560_v0 = vmov 0.0|0.0   ;;  %vm561_vm0 = vmmov 0   ;;  %v562_v1 = vmov 0.0   ;;  %v252_v2 = vld [vmem:[#allocation2] sm:$0xff]  ;;  %v253_v3 = vld [vmem:[#allocation2 + $0x8] sm:$0xff] }
  0x2b   : > { %552 = vsyncadd (%p678_p7), [#allocation3], 4294966784  ;;  %481 = vmatprep.subr.bf16.mxu0 %v560_v0  ;;  %478 = vmatprep.mubr.msk.f32.mxu0 %vm561_vm0, %v562_v1  ;;  %v254_v4 = vld [vmem:[#allocation2 + $0x10] sm:$0xff]  ;;  %v482_v5 = vpack.c.bf16 %v253_v3, %v252_v2  ;;  %v255_v6 = vld [vmem:[#allocation2 + $0x18] sm:$0xff]  ;;  %vm265_vm1 = vcmask 261120   ;;  %vm352_vm2 = vcmask 7168  }
  0x2c   : > { %s680_s19 = smov (!%p240_p2, %s599_s19), 1  ;;  %v485_v7 = vpack.c.bf16 %v255_v6, %v254_v4  ;;  %v460_v9 = vld [vmem:[%s668_s2] ss:$0 sm:$0xff] }
  0x2d   : > { %s640_s11 = sshll.u32 %s680_s19, 3  ;;  %483 = vmatpush3.bf16.msra.mxu0 %v482_v5  ;;  %v462_v13 = vld [vmem:[%s669_s3] ss:$0 sm:$0xff] }
  0x2e   : > { %484 = vmatprep.subr.bf16.mxu0 %v560_v0  ;;  %s243_s14 = scalar_lea.vmem %s666_s0, %s640_s11  ;;  %s247_s22 = scalar_lea.vmem %s670_s4, %s640_s11 }
  0x2f   : > { %v258_v8 = vld [vmem:[%s243_s14] sm:$0xff]  ;;  %s251_s25 = scalar_lea.vmem %s671_s5, %s640_s11 }
  0x30   : > { %v350_v17 = vld [vmem:[%s247_s22] sm:$0xff] }
  0x31   : > { %486 = vmatpush3.bf16.msra.mxu0 %v485_v7 }
  0x34   : > { %479 = vmatmul.mubr.msk.f32.vlgmr.msra.gmra.mrb[0].mxu0 %vm265_vm1, %v258_v8 }
 0x107   : > { %v335_v10 = vpop.f32.mrb[0].mxu0 }
 0x108   : > { %v336_v11 = vadd.f32 %v460_v9, %v335_v10  ;;  %v480_v12 = vpop.f32.mrb[1].mxu0 }
 0x10a   : > { %511 = vtanh.f32 %v336_v11 }
 0x114   : > { %v512_v14 = vpop.eup %511 }
 0x115   : > { %v346_v15 = vmul.f32 %v512_v14, %v462_v13 }
 0x117   : > { %v347_v16 = vsel %vm265_vm1, %v346_v15, 0.0 }
 0x118   : > { %348 = vadd.xlane.f32.xlu0 %v347_v16 }
 0x1a5   : > { %v349_v18 = vpop.xlane.xlu0 %348 }
 0x1a6   : > { %v351_v19 = vadd.f32 %v350_v17, %v349_v18 }
 0x1a8   : > { %v353_v20 = vsel %vm352_vm2, %v351_v19, -inf }
 0x1a9   : > { %v354_v21 = vrot.slane %v353_v20, 4 }
 0x1ab   : > { %v355_v22 = vmax.f32 %v353_v20, %v354_v21 }
 0x1ad   : > { %v356_v23 = vrot.slane %v355_v22, 2 }
 0x1af   : > { %v357_v24 = vmax.f32 %v355_v22, %v356_v23 }
 0x1b1   : > { %v358_v25 = vrot.slane %v357_v24, 1 }
 0x1b3   : > { %v359_v26 = vmax.f32 %v357_v24, %v358_v25 }
 0x1b5   : > { %v360_v27 = vsub.f32 %v351_v19, %v359_v26 }
 0x1b7   : > { %v361_v28 = vmul.f32 1.442695, %v360_v27 }
 0x1b9   : > { %513 = vpow2.f32 %v361_v28 }
 0x1c3   : > { %v514_v29 = vpop.eup %513 }
 0x1c4   : > { %v363_v30 = vsel %vm352_vm2, %v514_v29, 0.0 }
 0x1c5   : > { %v364_v31 = vrot.slane %v363_v30, 4 }
 0x1c7   : > { %v365_v32 = vadd.f32 %v364_v31, %v363_v30 }
 0x1c9   : > { %v366_v33 = vrot.slane %v365_v32, 2 }
 0x1cb   : > { %v367_v34 = vadd.f32 %v366_v33, %v365_v32 }
 0x1cd   : > { %v368_v35 = vrot.slane %v367_v34, 1 }
 0x1cf   : > { %v369_v36 = vadd.f32 %v368_v35, %v367_v34 }
 0x1d1   : > { %515 = vrcp.f32 %v369_v36 }
 0x1db   : > { %v516_v37 = vpop.eup %515 }
 0x1dc   : > { %v371_v38 = vmul.f32 %v516_v37, %v514_v29 }
 0x1de   : > { %372 = vst.msk [vmem:[%s251_s25] sm:$0xff] %vm352_vm2, %v371_v38 }
 0x1df PF: > { %s16_s18 = sadd.s32 1, %s555_s18  }
 0x1e0   : > { %p13_p3 = scmp.ge.s32.totalorder %s16_s18, 4  }
 0x1e2   :  { %15 = sbr.rel (!%p13_p3) target bundleno = 1 (0x1), region = 78 }
 0x1e9   :  { %392 = vsyncpa [#allocation3], 1 }
 0x1ea   :  { %394 = vsyncpa [#allocation3 + $0x1], 1 }

</bundles_post_ra>
